<compile_context>
chip_gen: v5e
topology: v5e:2x2
jax: 0.10.0
libtpu: 0.0.40
codegen_flags: <defaults>
</compile_context>

<pallas_src>
import jax
import jax.numpy as jnp
from jax.experimental import pallas as pl
from jax.experimental.pallas import tpu as pltpu


def _round_up(v, m):
    return ((v + m - 1) // m) * m


def _make_kernel(eps, c, tile_hw, chunk):
    """Kernel over a (Nb, C, tile_hw) block. Stats over C, per lane."""
    inv_c = 1.0 / float(c)
    n_chunks = tile_hw // chunk  # chunk always divides tile_hw by construction

    def _normalize(x, w, b):
        # x: (Nb, C, chunk) f32; w/b: (1, C, 1) f32.
        sum_x = jnp.sum(x, axis=1, keepdims=True)          # (Nb, 1, chunk)
        sum_x2 = jnp.sum(x * x, axis=1, keepdims=True)     # (Nb, 1, chunk)
        mean = sum_x * jnp.float32(inv_c)
        var = jnp.maximum(sum_x2 * jnp.float32(inv_c) - mean * mean, 0.0)
        scale = jax.lax.rsqrt(var + jnp.float32(eps))
        # TODO(synk): single-pass E[x^2]-E[x]^2 can lose precision when
        # |mean| >> std; a two-pass variant over the VMEM-resident chunk would
        # cost only extra VMEM reads if tighter accuracy is ever required.
        return (x - mean) * scale * w + b

    def kernel(x_ref, w_ref, b_ref, o_ref):
        # Hoisted, resident affine params (f32, tiny).
        w = w_ref[...][None, :, :]                          # (1, C, 1)
        b = b_ref[...][None, :, :]                          # (1, C, 1)

        if n_chunks == 1:
            x = x_ref[...].astype(jnp.float32)
            o_ref[...] = _normalize(x, w, b).astype(o_ref.dtype)
        else:
            # Bound live f32 temporaries: process the lane axis in chunks so
            # peak scratch is ~Nb*C*chunk*4 bytes, independent of tile size.
            def body(i, carry):
                off = pl.multiple_of(i * chunk, 128)
                x = x_ref[:, :, pl.ds(off, chunk)].astype(jnp.float32)
                o_ref[:, :, pl.ds(off, chunk)] = _normalize(x, w, b).astype(
                    o_ref.dtype)
                return carry

            jax.lax.fori_loop(0, n_chunks, body, 0, unroll=False)

    return kernel


def _pick_tiling(N, C, HW, in_isz, out_isz,
                 target_step_bytes=8 * 1024 * 1024):
    """Pick (Nb, tile_hw): per-step byte-budgeted spatial tile; batch images
    per step when a single image's full spatial extent is below the budget."""
    # Double-buffered in+out bytes per spatial lane per image.
    per_lane = 2 * C * (in_isz + out_isz)

    if HW <= 128:
        tile_hw = HW
    else:
        desired = max(128, (target_step_bytes // per_lane) // 128 * 128)
        # Full extent is always a legal last-dim block (no ragged tiles);
        # otherwise take a 128-multiple tile and let the last tile be ragged.
        tile_hw = HW if desired >= HW else int(desired)

    num_hw_tiles = pl.cdiv(HW, tile_hw)

    Nb = 1
    if num_hw_tiles == 1:
        per_image = per_lane * _round_up(HW, 128)
        max_nb = max(1, int(target_step_bytes // per_image))
        # Largest divisor of N that fits the budget (keeps the batch grid exact).
        for d in range(min(N, max_nb), 0, -1):
            if N % d == 0:
                Nb = d
                break
    return Nb, tile_hw


def _pick_chunk(Nb, C, tile_hw, max_chunk_f32_bytes=2 * 1024 * 1024):
    """Largest 128-multiple divisor of tile_hw keeping the per-chunk f32
    working set within budget. Falls back to a single chunk when the lane
    extent is small or not 128-divisible (full-extent blocks)."""
    if tile_hw <= 128 or tile_hw % 128 != 0:
        return tile_hw
    max_lanes = max(128, max_chunk_f32_bytes // (4 * Nb * max(C, 1)))
    best = 128
    t = 128
    while t <= tile_hw:
        if tile_hw % t == 0 and t <= max_lanes:
            best = t
        t += 128
    return best


def layernorm2d_channels_first(x, weight, bias, eps=1e-6,
                               tile_hw=None, chunk_hw=None):
    """x: (N, C, H, W); weight/bias: (C,). Returns (N, C, H, W)."""
    N, C, H, W = x.shape
    HW = H * W

    in_isz = jnp.dtype(x.dtype).itemsize
    out_isz = in_isz

    if tile_hw is not None:
        # User override: clamp to a legal block (128-multiple or full extent),
        # never silently replaced by a VMEM-blowing full-HW block.
        tile_hw = max(1, int(tile_hw))
        if tile_hw >= HW or HW < 128:
            tile_hw = HW
        else:
            tile_hw = max(128, (tile_hw // 128) * 128)
        Nb = 1
    else:
        Nb, tile_hw = _pick_tiling(N, C, HW, in_isz, out_isz)

    if chunk_hw is not None:
        chunk = max(1, int(chunk_hw))
        if (chunk >= tile_hw or tile_hw % chunk != 0
                or (chunk % 128 != 0 and chunk != tile_hw)):
            chunk = tile_hw
    else:
        chunk = _pick_chunk(Nb, C, tile_hw)

    x3 = x.reshape(N, C, HW)
    w2 = weight.reshape(C, 1).astype(jnp.float32)
    b2 = bias.reshape(C, 1).astype(jnp.float32)

    num_hw_tiles = pl.cdiv(HW, tile_hw)
    num_n_blocks = N // Nb

    # Leading "parallel" axis = the larger extent -> even 2-TC split on v7x.
    if num_hw_tiles >= num_n_blocks:
        grid = (num_hw_tiles, num_n_blocks)
        x_map = lambda t, n: (n, 0, t)
        wb_map = lambda t, n: (0, 0)
    else:
        grid = (num_n_blocks, num_hw_tiles)
        x_map = lambda n, t: (n, 0, t)
        wb_map = lambda n, t: (0, 0)

    # Explicit scoped-VMEM limit: double-buffered in+out blocks plus the
    # chunked f32 temporaries, with headroom; capped at 40 MiB (safe under
    # v7x's 64 MiB physical VMEM, trivially so on 128 MiB parts).
    C_pad = _round_up(C, 16)
    tile_pad = _round_up(tile_hw, 128)
    chunk_pad = _round_up(chunk, 128)
    pipelined_bytes = 2 * Nb * C_pad * tile_pad * (in_isz + out_isz)
    f32_temp_bytes = 4 * Nb * C_pad * chunk_pad * 4
    vmem_limit = int(1.25 * (pipelined_bytes + f32_temp_bytes)) + (1 << 20)
    vmem_limit = max(vmem_limit, 4 * 1024 * 1024)
    vmem_limit = min(vmem_limit, 40 * 1024 * 1024)

    out3 = pl.pallas_call(
        _make_kernel(eps, C, tile_hw, chunk),
        out_shape=jax.ShapeDtypeStruct((N, C, HW), x.dtype),
        grid_spec=pltpu.PrefetchScalarGridSpec(
            num_scalar_prefetch=0,
            grid=grid,
            in_specs=[
                pl.BlockSpec((Nb, C, tile_hw), x_map),
                pl.BlockSpec((C, 1), wb_map),
                pl.BlockSpec((C, 1), wb_map),
            ],
            out_specs=pl.BlockSpec((Nb, C, tile_hw), x_map),
        ),
        compiler_params=pltpu.CompilerParams(
            dimension_semantics=("parallel", "parallel"),
            vmem_limit_bytes=vmem_limit,
        ),
    )(x3, w2, b2)

    return out3.reshape(N, C, H, W)


def _reference(x, weight, bias, eps=1e-6):
    u = jnp.mean(x, axis=1, keepdims=True)
    s = jnp.mean((x - u) ** 2, axis=1, keepdims=True)
    y = (x - u) / jnp.sqrt(s + eps)
    return weight[None, :, None, None] * y + bias[None, :, None, None]


if __name__ == "__main__":
    key = jax.random.PRNGKey(0)
    kx, kw, kb, kx2 = jax.random.split(key, 4)

    N, C, H, W = 2, 4, 16, 16
    x = jax.random.normal(kx, (N, C, H, W), dtype=jnp.float32)

    # 1) Module-default parameters (weight=ones, bias=zeros), auto tiling
    #    (single batched (N, C, HW) block per step for this small shape).
    weight = jnp.ones((C,), dtype=jnp.float32)
    bias = jnp.zeros((C,), dtype=jnp.float32)
    out = jax.block_until_ready(layernorm2d_channels_first(x, weight, bias, eps=1e-6))
    ref = _reference(x, weight, bias, eps=1e-6)
    assert out.shape == (N, C, H, W)
    assert jnp.allclose(out, ref, atol=1e-5, rtol=1e-5), "mismatch (default params)"

    # 2) Random affine params, forced tile_hw=128 -> multi-tile spatial grid.
    weight_r = jax.random.normal(kw, (C,), dtype=jnp.float32)
    bias_r = jax.random.normal(kb, (C,), dtype=jnp.float32)
    out_r = jax.block_until_ready(
        layernorm2d_channels_first(x, weight_r, bias_r, eps=1e-6, tile_hw=128)
    )
    ref_r = _reference(x, weight_r, bias_r, eps=1e-6)
    assert jnp.allclose(out_r, ref_r, atol=1e-5, rtol=1e-5), "mismatch (multi-tile)"

    # 3) Forced in-kernel chunk loop (tile=256 lanes, chunk=128 -> 2 chunks).
    out_c = jax.block_until_ready(
        layernorm2d_channels_first(x, weight_r, bias_r, eps=1e-6,
                                   tile_hw=256, chunk_hw=128)
    )
    assert jnp.allclose(out_c, ref_r, atol=1e-5, rtol=1e-5), "mismatch (chunked)"

    # 4) Ragged last spatial tile: HW=169 (13x13) with a 128-lane tile.
    x2 = jax.random.normal(kx2, (2, 4, 13, 13), dtype=jnp.float32)
    out2 = jax.block_until_ready(
        layernorm2d_channels_first(x2, weight_r, bias_r, eps=1e-6, tile_hw=128)
    )
    ref2 = _reference(x2, weight_r, bias_r, eps=1e-6)
    assert jnp.allclose(out2, ref2, atol=1e-5, rtol=1e-5), "mismatch (ragged tile)"

    print("KERNEL_OK")
</pallas_src>

<mosaic_0001>
module attributes {stable_mosaic.version = 11 : i64} {
  func.func @kernel(%arg0: i32, %arg1: i32, %arg2: memref<2x4x256xf32, #tpu.memory_space<vmem>>, %arg3: memref<4x1xf32, #tpu.memory_space<vmem>>, %arg4: memref<4x1xf32, #tpu.memory_space<vmem>>, %arg5: memref<2x4x256xf32, #tpu.memory_space<vmem>>) attributes {dimension_semantics = [#tpu.dimension_semantics<parallel>, #tpu.dimension_semantics<parallel>], iteration_bounds = array<i64: 1, 1>, scalar_prefetch = 0 : i64, scratch_operands = 0 : i64, tpu.core_type = #tpu.core_type<tc>, window_params = [{transform_indices = @transform_0, window_bounds = array<i64: 2, 4, 256>}, {pipeline_mode = #tpu.pipeline_mode<synchronous>, transform_indices = @transform_1, window_bounds = array<i64: 4, 1>}, {pipeline_mode = #tpu.pipeline_mode<synchronous>, transform_indices = @transform_2, window_bounds = array<i64: 4, 1>}, {transform_indices = @transform_3, window_bounds = array<i64: 2, 4, 256>}]} {
    %c0 = arith.constant 0 : index
    %c0_0 = arith.constant 0 : index
    %0 = vector.load %arg3[%c0, %c0_0] : memref<4x1xf32, #tpu.memory_space<vmem>>, vector<4x1xf32>
    %1 = vector.shape_cast %0 : vector<4x1xf32> to vector<1x4x1xf32>
    %c0_1 = arith.constant 0 : index
    %c0_2 = arith.constant 0 : index
    %2 = vector.load %arg4[%c0_1, %c0_2] : memref<4x1xf32, #tpu.memory_space<vmem>>, vector<4x1xf32>
    %3 = vector.shape_cast %2 : vector<4x1xf32> to vector<1x4x1xf32>
    %c0_3 = arith.constant 0 : index
    %c0_4 = arith.constant 0 : index
    %c0_5 = arith.constant 0 : index
    %4 = vector.load %arg2[%c0_3, %c0_4, %c0_5] : memref<2x4x256xf32, #tpu.memory_space<vmem>>, vector<2x4x256xf32>
    %cst = arith.constant dense<0.000000e+00> : vector<2x256xf32>
    %5 = vector.multi_reduction <add>, %4, %cst [1] : vector<2x4x256xf32> to vector<2x256xf32>
    %6 = vector.shape_cast %5 : vector<2x256xf32> to vector<2x1x256xf32>
    %7 = arith.mulf %4, %4 : vector<2x4x256xf32>
    %cst_6 = arith.constant dense<0.000000e+00> : vector<2x256xf32>
    %8 = vector.multi_reduction <add>, %7, %cst_6 [1] : vector<2x4x256xf32> to vector<2x256xf32>
    %9 = vector.shape_cast %8 : vector<2x256xf32> to vector<2x1x256xf32>
    %cst_7 = arith.constant 2.500000e-01 : f32
    %10 = vector.broadcast %cst_7 : f32 to vector<2x1x256xf32>
    %11 = arith.mulf %6, %10 : vector<2x1x256xf32>
    %cst_8 = arith.constant 2.500000e-01 : f32
    %12 = vector.broadcast %cst_8 : f32 to vector<2x1x256xf32>
    %13 = arith.mulf %9, %12 : vector<2x1x256xf32>
    %14 = arith.mulf %11, %11 : vector<2x1x256xf32>
    %15 = arith.subf %13, %14 : vector<2x1x256xf32>
    %cst_9 = arith.constant 0.000000e+00 : f32
    %16 = vector.broadcast %cst_9 : f32 to vector<2x1x256xf32>
    %17 = arith.maximumf %15, %16 : vector<2x1x256xf32>
    %cst_10 = arith.constant 9.99999997E-7 : f32
    %18 = vector.broadcast %cst_10 : f32 to vector<2x1x256xf32>
    %19 = arith.addf %17, %18 : vector<2x1x256xf32>
    %20 = math.rsqrt %19 : vector<2x1x256xf32>
    %21 = vector.broadcast %11 : vector<2x1x256xf32> to vector<2x4x256xf32>
    %22 = arith.subf %4, %21 : vector<2x4x256xf32>
    %23 = vector.broadcast %20 : vector<2x1x256xf32> to vector<2x4x256xf32>
    %24 = arith.mulf %22, %23 : vector<2x4x256xf32>
    %25 = vector.broadcast %1 : vector<1x4x1xf32> to vector<2x4x256xf32>
    %26 = arith.mulf %24, %25 : vector<2x4x256xf32>
    %27 = vector.broadcast %3 : vector<1x4x1xf32> to vector<2x4x256xf32>
    %28 = arith.addf %26, %27 : vector<2x4x256xf32>
    %c0_11 = arith.constant 0 : index
    %c0_12 = arith.constant 0 : index
    %c0_13 = arith.constant 0 : index
    %29 = vector.load %arg5[%c0_11, %c0_12, %c0_13] : memref<2x4x256xf32, #tpu.memory_space<vmem>>, vector<2x4x256xf32>
    tpu.vector_store %arg5[%c0_11, %c0_12, %c0_13], %28 {strides = array<i32>} : memref<2x4x256xf32, #tpu.memory_space<vmem>>, vector<2x4x256xf32>,
    return
  }
  func.func @transform_0(%arg0: i32, %arg1: i32) -> (i32, i32, i32) {
    %c0_i32 = arith.constant 0 : i32
    %c0_i32_0 = arith.constant 0 : i32
    return %arg1, %c0_i32, %arg0 : i32, i32, i32
  }
  func.func @transform_1(%arg0: i32, %arg1: i32) -> (i32, i32) {
    %c0_i32 = arith.constant 0 : i32
    %c0_i32_0 = arith.constant 0 : i32
    %c0_i32_1 = arith.constant 0 : i32
    return %c0_i32, %c0_i32_0 : i32, i32
  }
  func.func @transform_2(%arg0: i32, %arg1: i32) -> (i32, i32) {
    %c0_i32 = arith.constant 0 : i32
    %c0_i32_0 = arith.constant 0 : i32
    %c0_i32_1 = arith.constant 0 : i32
    return %c0_i32, %c0_i32_0 : i32, i32
  }
  func.func @transform_3(%arg0: i32, %arg1: i32) -> (i32, i32, i32) {
    %c0_i32 = arith.constant 0 : i32
    %c0_i32_0 = arith.constant 0 : i32
    return %arg1, %c0_i32, %arg0 : i32, i32, i32
  }
}

</mosaic_0001>

<bundles_post_ra>
// kernel: tpu_custom_call.1
= control target key start
LH: loop header
LB: loop body
LE: loop exit
PB: predicated region body
PF: predicated region fallthrough
CT: control target
= control target key end

     0   :  { %8 = vsyncpa [#allocation3], 0  ;;  %s401_s0 = inlined_call_operand.hbm [shape: f32[2,4,256], index: 0, kind: input, shape index: {}]   ;;  %s402_s1 = inlined_call_operand.vmem [shape: f32[4,1], index: 1, kind: input, shape index: {}]   ;;  %s403_s2 = inlined_call_operand.vmem [shape: f32[4,1], index: 2, kind: input, shape index: {}]   ;;  %s404_s3 = inlined_call_operand.hbm [shape: f32[2,4,256], index: 3, kind: output, shape index: {}]  }
   0x1   :  { %9 = vsyncpa [#allocation4], 0  ;;  %s14_s14 = sshll.u32 %s401_s0, 4  ;;  %s318_s15 = smov [#allocation2]   ;;  %s15_s14 = int_to_ptr.hbm [resolvable:$true] %s14_s14 }
   0x2   :  { %s16_s16 = sshll.u32 %s318_s15, 4  ;;  %s319_s17 = smov 128   ;;  %s17_s16 = int_to_ptr.vmem [resolvable:$true] %s16_s16 }
   0x3   :  { %s320_s18 = smov 8  }
   0x4   :  { %22 = dma.hbm_to_vmem [thread:$0]  %s15_s14, 256, %s17_s16, [#allocation3], %s319_s17, %s319_s17, %s320_s18  }
   0x5   :  { %314 = dma.done.wait [#allocation3], 256  }
   0x6   :  { %315 = vsyncadd [#allocation3], 4294967040  ;;  %v321_v0 = vmov 0   ;;  %v31_v1 = vld [vmem:[%s402_s1] sm:$0xf]  ;;  %v353_v2 = vld [vmem:[#allocation2] sm:$0xff] }
   0x7   :  { %257 = vset.pattern.permute.xlu0 %v321_v0  ;;  %v355_v3 = vld [vmem:[#allocation2 + $0x8] sm:$0xff]  ;;  %37 = vst [vmem:[#allocation1] ss:$2 sm:$0xff] %v353_v2  ;;  %v32_v4 = vld [vmem:[%s403_s2] sm:$0xf]  ;;  %v77_v5 = vmul.f32 %v353_v2, %v353_v2  ;;  %vm48_vm0 = vcmask 1043456  }
   0x8   :  { %210 = vperm.xlu0 %257, %v31_v1   ;;  %41 = vst [vmem:[#allocation1 + $0x10] ss:$2 sm:$0xff] %v355_v3  ;;  %v78_v6 = vmul.f32 %v355_v3, %v355_v3  ;;  %s323_s1 = smov [#allocation5]   ;;  %s238_s24 = sshll.u32 %s404_s3, 4  ;;  %s239_s24 = int_to_ptr.hbm [resolvable:$true] %s238_s24 }
   0x9   :  { %s236_s2 = sshll.u32 %s323_s1, 4  ;;  %s237_s2 = int_to_ptr.vmem [resolvable:$true] %s236_s2 }
   0xe   :  { %v38_v7 = vld.sshfl [vmem:[#allocation1] sm:$0xff pattern:$0x75316420]  ;;  %v39_v8 = vld.sshfl [vmem:[#allocation1 + $0x8] sm:$0xff pattern:$0x75316420] }
   0xf   :  { %v42_v9 = vld.sshfl [vmem:[#allocation1 + $0x10] sm:$0xff pattern:$0x75316420]  ;;  %v43_v10 = vld.sshfl [vmem:[#allocation1 + $0x18] sm:$0xff pattern:$0x75316420] }
  0x10   :  { %221 = vperm.xlu0 %257, %v32_v4   ;;  %v49_v11 = vsel %vm48_vm0, %v38_v7, 0.0  ;;  %v56_v12 = vsel %vm48_vm0, %v39_v8, 0.0  ;;  %v63_v13 = vsel %vm48_vm0, %v42_v9, 0.0  ;;  %v70_v14 = vsel %vm48_vm0, %v43_v10, 0.0  ;;  %81 = vst [vmem:[#allocation1] ss:$2 sm:$0xff] %v77_v5 }
  0x11   :  { %v50_v15 = vrot.slane %v49_v11, 4  ;;  %v57_v16 = vrot.slane %v56_v12, 4  ;;  %v64_v17 = vrot.slane %v63_v13, 4  ;;  %v71_v18 = vrot.slane %v70_v14, 4  ;;  %85 = vst [vmem:[#allocation1 + $0x10] ss:$2 sm:$0xff] %v78_v6 }
  0x13   :  { %v51_v19 = vadd.f32 %v50_v15, %v49_v11  ;;  %v58_v20 = vadd.f32 %v57_v16, %v56_v12  ;;  %v65_v21 = vadd.f32 %v64_v17, %v63_v13  ;;  %v72_v22 = vadd.f32 %v71_v18, %v70_v14 }
  0x15   :  { %v52_v23 = vrot.slane %v51_v19, 2  ;;  %v59_v24 = vrot.slane %v58_v20, 2  ;;  %v66_v25 = vrot.slane %v65_v21, 2  ;;  %v73_v26 = vrot.slane %v72_v22, 2 }
  0x17   :  { %v53_v27 = vadd.f32 %v52_v23, %v51_v19  ;;  %v60_v28 = vadd.f32 %v59_v24, %v58_v20  ;;  %v67_v29 = vadd.f32 %v66_v25, %v65_v21  ;;  %v74_v30 = vadd.f32 %v73_v26, %v72_v22  ;;  %v82_v31 = vld.sshfl [vmem:[#allocation1] sm:$0xff pattern:$0x75316420]  ;;  %v83_v32 = vld.sshfl [vmem:[#allocation1 + $0x8] sm:$0xff pattern:$0x75316420] }
  0x18   :  { %v86_v33 = vld.sshfl [vmem:[#allocation1 + $0x10] sm:$0xff pattern:$0x75316420]  ;;  %v87_v34 = vld.sshfl [vmem:[#allocation1 + $0x18] sm:$0xff pattern:$0x75316420] }
  0x19   :  { %v54_v35 = vrot.slane %v53_v27, 1  ;;  %v61_v36 = vrot.slane %v60_v28, 1  ;;  %v68_v37 = vrot.slane %v67_v29, 1  ;;  %v75_v38 = vrot.slane %v74_v30, 1 }
  0x1a   :  { %v92_v39 = vsel %vm48_vm0, %v82_v31, 0.0  ;;  %v99_v40 = vsel %vm48_vm0, %v83_v32, 0.0  ;;  %v106_v41 = vsel %vm48_vm0, %v86_v33, 0.0  ;;  %v113_v42 = vsel %vm48_vm0, %v87_v34, 0.0 }
  0x1b   :  { %v55_v43 = vadd.f32 %v54_v35, %v53_v27  ;;  %v62_v44 = vadd.f32 %v61_v36, %v60_v28  ;;  %v93_v45 = vrot.slane %v92_v39, 4  ;;  %v100_v46 = vrot.slane %v99_v40, 4 }
  0x1c   :  { %v107_v47 = vrot.slane %v106_v41, 4  ;;  %v114_v48 = vrot.slane %v113_v42, 4  ;;  %v69_v49 = vadd.f32 %v68_v37, %v67_v29  ;;  %v76_v50 = vadd.f32 %v75_v38, %v74_v30 }
  0x1d   :  { %v94_v51 = vadd.f32 %v93_v45, %v92_v39  ;;  %v101_v52 = vadd.f32 %v100_v46, %v99_v40  ;;  %v120_v55 = vmul.f32 0.25, %v55_v43  ;;  %v121_v56 = vmul.f32 0.25, %v62_v44 }
  0x1e   :  { %v108_v53 = vadd.f32 %v107_v47, %v106_v41  ;;  %v115_v54 = vadd.f32 %v114_v48, %v113_v42  ;;  %v122_v61 = vmul.f32 0.25, %v69_v49  ;;  %v123_v62 = vmul.f32 0.25, %v76_v50 }
  0x1f   :  { %v95_v57 = vrot.slane %v94_v51, 2  ;;  %v102_v58 = vrot.slane %v101_v52, 2  ;;  %v128_v5 = vmul.f32 %v120_v55, %v120_v55  ;;  %v129_v6 = vmul.f32 %v121_v56, %v121_v56 }
  0x20   :  { %v109_v59 = vrot.slane %v108_v53, 2  ;;  %v116_v60 = vrot.slane %v115_v54, 2  ;;  %v130_v11 = vmul.f32 %v122_v61, %v122_v61  ;;  %v131_v12 = vmul.f32 %v123_v62, %v123_v62 }
  0x21   :  { %v96_v63 = vadd.f32 %v95_v57, %v94_v51  ;;  %v103_v0 = vadd.f32 %v102_v58, %v101_v52  ;;  %v188_v13 = vrot.slane %v121_v56, 4  ;;  %v189_v14 = vrot.slane %v123_v62, 4 }
  0x22   :  { %v110_v1 = vadd.f32 %v109_v59, %v108_v53  ;;  %v117_v4 = vadd.f32 %v116_v60, %v115_v54 }
  0x23   :  { %v97_v7 = vrot.slane %v96_v63, 1  ;;  %v104_v8 = vrot.slane %v103_v0, 1  ;;  %v375_v19 = vsel %vm48_vm0, %v120_v55, %v188_v13  ;;  %v378_v20 = vsel %vm48_vm0, %v122_v61, %v189_v14 }
  0x24   :  { %v111_v9 = vrot.slane %v110_v1, 1  ;;  %v118_v10 = vrot.slane %v117_v4, 1  ;;  %v194_v25 = vsub.f32 %v353_v2, %v375_v19  ;;  %v195_v26 = vsub.f32 %v355_v3, %v378_v20 }
  0x25   :  { %v98_v15 = vadd.f32 %v97_v7, %v96_v63  ;;  %v105_v16 = vadd.f32 %v104_v8, %v103_v0 }
  0x26   :  { %v112_v17 = vadd.f32 %v111_v9, %v110_v1  ;;  %v119_v18 = vadd.f32 %v118_v10, %v117_v4 }
  0x27   :  { %v124_v21 = vmul.f32 0.25, %v98_v15  ;;  %v125_v22 = vmul.f32 0.25, %v105_v16 }
  0x28   :  { %v126_v23 = vmul.f32 0.25, %v112_v17  ;;  %v127_v24 = vmul.f32 0.25, %v119_v18 }
  0x29   :  { %v132_v27 = vsub.f32 %v124_v21, %v128_v5  ;;  %v133_v28 = vsub.f32 %v125_v22, %v129_v6 }
  0x2a   :  { %v134_v29 = vsub.f32 %v126_v23, %v130_v11  ;;  %v135_v30 = vsub.f32 %v127_v24, %v131_v12  ;;  %v322_v11 = vmov 839922192  }
  0x2b   :  { %v136_v31 = vmax.f32 %v132_v27, 0.0  ;;  %v137_v32 = vmax.f32 %v133_v28, 0.0  ;;  %v213_v12 = vunpack.c.l.s4 %v322_v11 }
  0x2c   :  { %v138_v33 = vmax.f32 %v134_v29, 0.0  ;;  %v139_v34 = vmax.f32 %v135_v30, 0.0 }
  0x2d   :  { %v140_v35 = vadd.f32 1e-06, %v136_v31  ;;  %v141_v36 = vadd.f32 1e-06, %v137_v32  ;;  %v214_v14 = vunpack.c.0.s8 %v213_v12 }
  0x2e   :  { %v142_v37 = vadd.f32 1e-06, %v138_v33  ;;  %v143_v38 = vadd.f32 1e-06, %v139_v34 }
  0x2f   :  { %258 = vrsqrt.f32 %v140_v35  ;;  %vm150_vm1 = vweird.f32 %v140_v35  ;;  %vm160_vm3 = vweird.f32 %v141_v36 }
  0x30   :  { %260 = vrsqrt.f32 %v141_v36  ;;  %vm170_vm5 = vweird.f32 %v142_v37  ;;  %vm180_vm8 = vweird.f32 %v143_v38 }
  0x31   :  { %262 = vrsqrt.f32 %v142_v37 }
  0x32   :  { %264 = vrsqrt.f32 %v143_v38 }
  0x35   :  { %v259_v2 = vpop.eup %258 }
  0x36   :  { %v261_v39 = vpop.eup %260  ;;  %v145_v40 = vmul.f32 %v259_v2, %v140_v35  ;;  %vm151_vm2 = vweird.f32 %v259_v2 }
  0x37   :  { %v263_v41 = vpop.eup %262  ;;  %v155_v42 = vmul.f32 %v261_v39, %v141_v36  ;;  %vm161_vm4 = vweird.f32 %v261_v39  ;;  %vm384_vm7 = vmor %vm150_vm1, %vm151_vm2 }
  0x38   :  { %v265_v43 = vpop.eup %264  ;;  %v146_v44 = vmul.f32 %v259_v2, %v145_v40  ;;  %v165_v45 = vmul.f32 %v263_v41, %v142_v37  ;;  %vm171_vm6 = vweird.f32 %v263_v41  ;;  %vm162_vm10 = vmor %vm160_vm3, %vm161_vm4 }
  0x39   :  { %v156_v46 = vmul.f32 %v261_v39, %v155_v42  ;;  %v175_v47 = vmul.f32 %v265_v43, %v143_v38  ;;  %vm181_vm9 = vweird.f32 %v265_v43  ;;  %vm172_vm11 = vmor %vm170_vm5, %vm171_vm6 }
  0x3a   :  { %v147_v48 = vmul.f32 0.5, %v146_v44  ;;  %v166_v49 = vmul.f32 %v263_v41, %v165_v45  ;;  %vm182_vm12 = vmor %vm180_vm8, %vm181_vm9 }
  0x3b   :  { %v157_v50 = vmul.f32 0.5, %v156_v46  ;;  %v176_v51 = vmul.f32 %v265_v43, %v175_v47 }
  0x3c   :  { %v148_v52 = vsub.f32 1.5, %v147_v48  ;;  %v167_v53 = vmul.f32 0.5, %v166_v49 }
  0x3d   :  { %v158_v55 = vsub.f32 1.5, %v157_v50  ;;  %v177_v56 = vmul.f32 0.5, %v176_v51 }
  0x3e   :  { %v149_v57 = vmul.f32 %v259_v2, %v148_v52  ;;  %v168_v58 = vsub.f32 1.5, %v167_v53 }
  0x3f   :  { %v159_v59 = vmul.f32 %v261_v39, %v158_v55  ;;  %v178_v60 = vsub.f32 1.5, %v177_v56 }
  0x40   :  { %v169_v61 = vmul.f32 %v263_v41, %v168_v58  ;;  %v153_v62 = vsel %vm384_vm7, %v259_v2, %v149_v57 }
  0x41   :  { %v163_v63 = vsel %vm162_vm10, %v261_v39, %v159_v59  ;;  %v179_v0 = vmul.f32 %v265_v43, %v178_v60 }
  0x42   :  { %v200_v1 = vrot.slane %v163_v63, 4  ;;  %v173_v4 = vsel %vm172_vm11, %v263_v41, %v169_v61 }
  0x43   :  { %v183_v5 = vsel %vm182_vm12, %v265_v43, %v179_v0 }
  0x44   :  { %v201_v6 = vrot.slane %v183_v5, 4  ;;  %v202_v7 = vsel %vm48_vm0, %v153_v62, %v200_v1 }
  0x45   :  { %v206_v8 = vmul.f32 %v202_v7, %v194_v25 }
  0x46   :  { %v203_v9 = vsel %vm48_vm0, %v173_v4, %v201_v6 }
  0x47   :  { %v207_v10 = vmul.f32 %v203_v9, %v195_v26 }
  0x7a   :  { %v211_v13 = vpop.permute.xlu0 %210 }
  0x7b   :  { %v215_v15 = vperm.slane %v211_v13, %v214_v14 }
  0x7d   :  { %v217_v17 = vmul.f32 %v215_v15, %v206_v8  ;;  %v218_v18 = vmul.f32 %v215_v15, %v207_v10 }
  0x82   :  { %v222_v16 = vpop.permute.xlu0 %221 }
  0x83   :  { %v226_v19 = vperm.slane %v222_v16, %v214_v14 }
  0x85   :  { %v228_v21 = vadd.f32 %v226_v19, %v217_v17  ;;  %v229_v22 = vadd.f32 %v226_v19, %v218_v18 }
  0x87   :  { %230 = vst [vmem:[#allocation5] sm:$0xff] %v228_v21 }
  0x88   :  { %231 = vst [vmem:[#allocation5 + $0x8] sm:$0xff] %v229_v22 }
  0x89   :  { %244 = dma.vmem_to_hbm [thread:$0]  %s237_s2, 256, %s239_s24, [#allocation4], %s319_s17, %s319_s17, %s320_s18  }
  0x8a   :  { %316 = dma.done.wait [#allocation4], 256  }
  0x8b   :  { %317 = vsyncadd [#allocation4], 4294967040 }
  0x8c   :  { %249 = vsyncpa [#allocation3], 1 }
  0x8d   :  { %250 = vsyncpa [#allocation4], 1 }

</bundles_post_ra>
